<compile_context>
chip_gen: v7x
topology: tpu7x:2x2x1
jax: 0.10.0
libtpu: 0.0.40
codegen_flags: <defaults>
</compile_context>

<pallas_src>
import functools

import jax
import jax.numpy as jnp
from jax import lax
from jax.experimental import pallas as pl
from jax.experimental.pallas import tpu as pltpu

ALPHA, BETA, GAMMA = 1.0, 0.1, 0.01   # loss weights from NKATPhysicsLoss.__init__
FEAT = 4                              # synthetic features: [N/100, log N, sqrt N, 1]
HIDDEN = 32
OUT = 4                               # model heads: (S, gamma, delta, tc)
MAX_TILE_B = 512                      # lane tile for the loss grid (multiple of 128)


def _vmem_spec():
    return pl.BlockSpec(memory_space=pltpu.MemorySpace.VMEM)


def _round_up(x, m):
    return ((x + m - 1) // m) * m


def _sigmoid(x):
    return 0.5 * (jnp.tanh(0.5 * x) + 1.0)                        # overflow-safe


def _softplus(x):
    return jnp.maximum(x, 0.0) + jnp.log1p(jnp.exp(-jnp.abs(x)))  # overflow-safe


# ---------------------------------------------------------------------------
# Synthetic NKAT model kernel (produces the loss inputs the way a training
# loop would: predictions, gamma, delta, tc = model(N)).
# ---------------------------------------------------------------------------
def model_kernel(n_ref, w1c0_ref, w1c1_ref, w1c2_ref, c3b_ref,
                 w2_ref, b2_ref, w3_ref, b3_ref,
                 s_ref, g_ref, d_ref, t_ref):
    n = n_ref[...]                                   # (1, B)
    f_scaled = n * (1.0 / 100.0)
    f_log = jnp.log(n)
    f_sqrt = jnp.sqrt(n)
    # Layer 1 (K = 4): VPU broadcast FMAs; W1 columns arrive pre-split and
    # c3b already folds b1 + W1[:, 3] (the constant feature).
    h1 = jnp.maximum(c3b_ref[...] + w1c0_ref[...] * f_scaled
                     + w1c1_ref[...] * f_log + w1c2_ref[...] * f_sqrt, 0.0)
    # Layer 2 (32x32 contraction): MXU.
    h2 = jnp.maximum(
        jnp.dot(w2_ref[...], h1, preferred_element_type=jnp.float32) + b2_ref[...],
        0.0)                                         # (HIDDEN, B)
    # Heads: one (OUT, HIDDEN) x (HIDDEN, B) MXU dot, static sublane slices.
    out = jnp.dot(w3_ref[...], h2, preferred_element_type=jnp.float32) + b3_ref[...]
    s_ref[...] = out[0:1, :]                         # S(N) (raw)
    g_ref[...] = _sigmoid(out[1:2, :])               # gamma in (0, 1)
    d_ref[...] = _softplus(out[2:3, :])              # delta > 0
    t_ref[...] = _softplus(out[3:4, :]) + 0.5        # tc > 0.5


@jax.jit
def model_forward(n_values, params):
    """Synthetic NKAT model; returns (S, gamma, delta, tc), each shape (B,)."""
    w1, b1, w2, b2, w3, b3 = params                  # torch layout: W (out, in)
    B = n_values.shape[0]
    f32 = jnp.float32
    w1 = w1.astype(f32)
    col = lambda j: w1[:, j].reshape(HIDDEN, 1)
    out_sds = jax.ShapeDtypeStruct((1, B), f32)
    s, g, d, t = pl.pallas_call(
        model_kernel,
        out_shape=(out_sds, out_sds, out_sds, out_sds),
        in_specs=[_vmem_spec()] * 9,
        out_specs=(_vmem_spec(),) * 4,
    )(n_values.reshape(1, B).astype(f32),
      col(0), col(1), col(2),
      (b1.astype(f32) + w1[:, 3]).reshape(HIDDEN, 1),
      w2.astype(f32), b2.reshape(HIDDEN, 1).astype(f32),
      w3.astype(f32), b3.reshape(OUT, 1).astype(f32))
    return s[0], g[0], d[0], t[0]


# ---------------------------------------------------------------------------
# Fused NKATPhysicsLoss kernel: data + physics terms over a lane-tiled grid.
# ---------------------------------------------------------------------------
# Slab row layout (all rows sorted by ascending N); row 7 is zero padding.
_PRED, _TGT, _N, _GAM, _DLT, _TC, _NEXT_S = range(7)
# SMEM accumulator slots.
_SSE, _RIEM, _MONO, _ASUM, _ACNT, _PGAM, _PDLT = range(7)


def loss_kernel(slab_ref, out_ref, acc_ref, *, batch, tile):
    pid = pl.program_id(0)
    last = pl.num_programs(0) - 1

    @pl.when(pid == 0)
    def _init():
        for i in range(8):
            acc_ref[i] = jnp.float32(0.0)

    pred = slab_ref[_PRED:_PRED + 1, :]              # sorted S        (1, tile)
    tgt = slab_ref[_TGT:_TGT + 1, :]
    n = slab_ref[_N:_N + 1, :]                       # sorted N  (padding = 1.0)
    gam = slab_ref[_GAM:_GAM + 1, :]
    dlt = slab_ref[_DLT:_DLT + 1, :]
    tc = slab_ref[_TC:_TC + 1, :]                    # (padding = 1.0)
    s_next = slab_ref[_NEXT_S:_NEXT_S + 1, :]        # sorted S shifted by one

    lane = lax.broadcasted_iota(jnp.int32, (1, tile), 1) + pid * tile
    vmask = (lane < batch).astype(jnp.float32)

    # Data term: sum of squared errors (mean taken at finalize).
    diff = pred - tgt
    acc_ref[_SSE] += jnp.sum(diff * diff * vmask)

    # Riemann constraint: (gamma * log(N / tc) - 0.5)^2.  log(N) computed once
    # and reused below for the asymptotic term (EUP is the binding slot here).
    log_n = jnp.log(n)
    r = gam * (log_n - jnp.log(tc)) - 0.5
    acc_ref[_RIEM] += jnp.sum(r * r * vmask)

    # Monotonicity: relu(sorted_S[i] - sorted_S[i+1]) over the B-1 pairs.
    pmask = (lane < (batch - 1)).astype(jnp.float32)
    acc_ref[_MONO] += jnp.sum(jnp.maximum(pred - s_next, 0.0) * pmask)

    # Asymptotic behaviour for N > 100: (S / N^gamma - 1)^2.
    amask = jnp.where((lane < batch) & (n > 100.0), 1.0, 0.0)
    theo = jnp.exp(gam * log_n)                      # N ** gamma (> 0)
    ae = pred / theo - 1.0
    acc_ref[_ASUM] += jnp.sum(ae * ae * amask)
    acc_ref[_ACNT] += jnp.sum(amask)

    # Positivity of gamma and delta.
    acc_ref[_PGAM] += jnp.sum(jnp.maximum(-gam, 0.0) * vmask)
    acc_ref[_PDLT] += jnp.sum(jnp.maximum(-dlt, 0.0) * vmask)

    @pl.when(pid == last)
    def _finalize():
        inv_b = 1.0 / batch
        data_loss = acc_ref[_SSE] * inv_b
        riemann = acc_ref[_RIEM] * inv_b
        mono = acc_ref[_MONO] * (1.0 / max(batch - 1, 1))   # 0 when batch == 1
        cnt = acc_ref[_ACNT]
        asym = jnp.where(cnt > 0.0, acc_ref[_ASUM] / jnp.maximum(cnt, 1.0), 0.0)
        pos = (acc_ref[_PGAM] + acc_ref[_PDLT]) * inv_b
        out_ref[0] = data_loss
        out_ref[1] = riemann + mono + asym + pos


@jax.jit
def nkat_physics_loss(predictions, targets, n_values, gamma_pred, delta_pred,
                      tc_pred, params):
    """NKATPhysicsLoss.forward — returns (total, data_loss, physics_loss, reg).

    Assumption (see header): predictions / gamma_pred are the outputs of the
    per-sample NKAT model evaluated at n_values with the same params passed
    here, so model(sorted_N) / model(N[N>100]) are argsort-gathered rows of
    predictions / gamma_pred and the kernel skips the model re-evaluation.
    """
    f32 = jnp.float32
    B = n_values.shape[0]

    perm = jnp.argsort(n_values)
    sort_pred = predictions.astype(f32)[perm]
    sort_tgt = targets.astype(f32)[perm]
    sort_n = n_values.astype(f32)[perm]
    sort_gam = gamma_pred.astype(f32)[perm]
    sort_dlt = delta_pred.astype(f32)[perm]
    sort_tc = tc_pred.astype(f32)[perm]
    next_s = jnp.roll(sort_pred, -1)      # sorted_S[i+1]; last lane masked in-kernel

    # Lane tiling: blocks are (8, tile), tile a multiple of 128, padded batch.
    tile = min(MAX_TILE_B, _round_up(B, 128))
    b_pad = _round_up(B, tile)
    num_tiles = b_pad // tile

    def pad(row, fill):
        return jnp.pad(row, (0, b_pad - B), constant_values=fill)

    slab = jnp.stack([
        pad(sort_pred, 0.0), pad(sort_tgt, 0.0), pad(sort_n, 1.0),
        pad(sort_gam, 0.0), pad(sort_dlt, 0.0), pad(sort_tc, 1.0),
        pad(next_s, 0.0), jnp.zeros((b_pad,), f32),
    ])                                    # (8, b_pad) — one lane-dense DMA stream

    kernel = functools.partial(loss_kernel, batch=B, tile=tile)
    out = pl.pallas_call(
        kernel,
        out_shape=jax.ShapeDtypeStruct((2,), f32),
        grid_spec=pltpu.PrefetchScalarGridSpec(
            num_scalar_prefetch=0,
            grid=(num_tiles,),
            in_specs=[pl.BlockSpec((8, tile), lambda i: (0, i))],
            out_specs=pl.BlockSpec(memory_space=pltpu.MemorySpace.SMEM),
            scratch_shapes=[pltpu.SMEM((8,), f32)],
        ),
        compiler_params=pltpu.CompilerParams(
            dimension_semantics=("arbitrary",),
            vmem_limit_bytes=32 * 1024 * 1024,
        ),
    )(slab)

    data_loss, physics_loss = out[0], out[1]
    # L2 regularization (sum of squared Frobenius norms) computed once in the
    # wrapper instead of re-summing the weights every grid step in-kernel.
    reg_loss = sum(jnp.sum(p.astype(f32) ** 2) for p in params)
    total = ALPHA * data_loss + BETA * physics_loss + GAMMA * reg_loss
    return total, data_loss, physics_loss, reg_loss


if __name__ == "__main__":
    key = jax.random.PRNGKey(0)
    ks = jax.random.split(key, 9)
    B = 8

    # Deterministic synthetic model parameters (torch nn.Linear layout).
    params = (
        0.1 * jax.random.normal(ks[0], (HIDDEN, FEAT), jnp.float32),    # W1
        0.1 * jax.random.normal(ks[1], (HIDDEN,), jnp.float32),         # b1
        0.1 * jax.random.normal(ks[2], (HIDDEN, HIDDEN), jnp.float32),  # W2
        0.1 * jax.random.normal(ks[3], (HIDDEN,), jnp.float32),         # b2
        0.1 * jax.random.normal(ks[4], (OUT, HIDDEN), jnp.float32),     # W3
        0.1 * jax.random.normal(ks[5], (OUT,), jnp.float32),            # b3
    )

    # Dimension values N: half below 100, half above (exercises both branches).
    n_small = jax.random.uniform(ks[6], (B // 2,), jnp.float32, 10.0, 90.0)
    n_large = jax.random.uniform(ks[7], (B // 2,), jnp.float32, 110.0, 300.0)
    n_values = jnp.concatenate([n_small, n_large])
    targets = jax.random.normal(ks[8], (B,), jnp.float32)

    # Model predictions on N (as the training loop would produce them).
    predictions, gamma_pred, delta_pred, tc_pred = model_forward(n_values, params)

    total, data_l, phys_l, reg_l = nkat_physics_loss(
        predictions, targets, n_values, gamma_pred, delta_pred, tc_pred, params)
    jax.block_until_ready((total, data_l, phys_l, reg_l))
    print("KERNEL_OK")
</pallas_src>

<mosaic_0001>
module attributes {stable_mosaic.version = 11 : i64} {
  func.func @model_kernel(%arg0: memref<1x8xf32, #tpu.memory_space<vmem>>, %arg1: memref<32x1xf32, #tpu.memory_space<vmem>>, %arg2: memref<32x1xf32, #tpu.memory_space<vmem>>, %arg3: memref<32x1xf32, #tpu.memory_space<vmem>>, %arg4: memref<32x1xf32, #tpu.memory_space<vmem>>, %arg5: memref<32x32xf32, #tpu.memory_space<vmem>>, %arg6: memref<32x1xf32, #tpu.memory_space<vmem>>, %arg7: memref<4x32xf32, #tpu.memory_space<vmem>>, %arg8: memref<4x1xf32, #tpu.memory_space<vmem>>, %arg9: memref<1x8xf32, #tpu.memory_space<vmem>>, %arg10: memref<1x8xf32, #tpu.memory_space<vmem>>, %arg11: memref<1x8xf32, #tpu.memory_space<vmem>>, %arg12: memref<1x8xf32, #tpu.memory_space<vmem>>) attributes {dimension_semantics = [], scalar_prefetch = 0 : i64, scratch_operands = 0 : i64, tpu.core_type = #tpu.core_type<tc>} {
    %c0 = arith.constant 0 : index
    %c0_0 = arith.constant 0 : index
    %0 = vector.load %arg0[%c0, %c0_0] : memref<1x8xf32, #tpu.memory_space<vmem>>, vector<1x8xf32>
    %cst = arith.constant 0.00999999977 : f32
    %1 = vector.broadcast %cst : f32 to vector<1x8xf32>
    %2 = arith.mulf %0, %1 : vector<1x8xf32>
    %3 = math.log %0 : vector<1x8xf32>
    %4 = math.sqrt %0 : vector<1x8xf32>
    %c0_1 = arith.constant 0 : index
    %c0_2 = arith.constant 0 : index
    %5 = vector.load %arg4[%c0_1, %c0_2] : memref<32x1xf32, #tpu.memory_space<vmem>>, vector<32x1xf32>
    %c0_3 = arith.constant 0 : index
    %c0_4 = arith.constant 0 : index
    %6 = vector.load %arg1[%c0_3, %c0_4] : memref<32x1xf32, #tpu.memory_space<vmem>>, vector<32x1xf32>
    %7 = vector.broadcast %6 : vector<32x1xf32> to vector<32x8xf32>
    %8 = vector.broadcast %2 : vector<1x8xf32> to vector<32x8xf32>
    %9 = arith.mulf %7, %8 : vector<32x8xf32>
    %10 = vector.broadcast %5 : vector<32x1xf32> to vector<32x8xf32>
    %11 = arith.addf %10, %9 : vector<32x8xf32>
    %c0_5 = arith.constant 0 : index
    %c0_6 = arith.constant 0 : index
    %12 = vector.load %arg2[%c0_5, %c0_6] : memref<32x1xf32, #tpu.memory_space<vmem>>, vector<32x1xf32>
    %13 = vector.broadcast %12 : vector<32x1xf32> to vector<32x8xf32>
    %14 = vector.broadcast %3 : vector<1x8xf32> to vector<32x8xf32>
    %15 = arith.mulf %13, %14 : vector<32x8xf32>
    %16 = arith.addf %11, %15 : vector<32x8xf32>
    %c0_7 = arith.constant 0 : index
    %c0_8 = arith.constant 0 : index
    %17 = vector.load %arg3[%c0_7, %c0_8] : memref<32x1xf32, #tpu.memory_space<vmem>>, vector<32x1xf32>
    %18 = vector.broadcast %17 : vector<32x1xf32> to vector<32x8xf32>
    %19 = vector.broadcast %4 : vector<1x8xf32> to vector<32x8xf32>
    %20 = arith.mulf %18, %19 : vector<32x8xf32>
    %21 = arith.addf %16, %20 : vector<32x8xf32>
    %cst_9 = arith.constant 0.000000e+00 : f32
    %22 = vector.broadcast %cst_9 : f32 to vector<32x8xf32>
    %23 = arith.maximumf %21, %22 : vector<32x8xf32>
    %c0_10 = arith.constant 0 : index
    %c0_11 = arith.constant 0 : index
    %24 = vector.load %arg5[%c0_10, %c0_11] : memref<32x32xf32, #tpu.memory_space<vmem>>, vector<32x32xf32>
    %cst_12 = arith.constant dense<0.000000e+00> : vector<32x8xf32>
    %25 = tpu.matmul %24, %23, %cst_12 {dimension_numbers = #tpu.dot_dimension_numbers<[1], [0], [0], [1], [0, 0, 1, 1], [], []>} : vector<32x32xf32>, vector<32x8xf32>, vector<32x8xf32> -> vector<32x8xf32>
    %c0_13 = arith.constant 0 : index
    %c0_14 = arith.constant 0 : index
    %26 = vector.load %arg6[%c0_13, %c0_14] : memref<32x1xf32, #tpu.memory_space<vmem>>, vector<32x1xf32>
    %27 = vector.broadcast %26 : vector<32x1xf32> to vector<32x8xf32>
    %28 = arith.addf %25, %27 : vector<32x8xf32>
    %cst_15 = arith.constant 0.000000e+00 : f32
    %29 = vector.broadcast %cst_15 : f32 to vector<32x8xf32>
    %30 = arith.maximumf %28, %29 : vector<32x8xf32>
    %c0_16 = arith.constant 0 : index
    %c0_17 = arith.constant 0 : index
    %31 = vector.load %arg7[%c0_16, %c0_17] : memref<4x32xf32, #tpu.memory_space<vmem>>, vector<4x32xf32>
    %cst_18 = arith.constant dense<0.000000e+00> : vector<4x8xf32>
    %32 = tpu.matmul %31, %30, %cst_18 {dimension_numbers = #tpu.dot_dimension_numbers<[1], [0], [0], [1], [0, 0, 1, 1], [], []>} : vector<4x32xf32>, vector<32x8xf32>, vector<4x8xf32> -> vector<4x8xf32>
    %c0_19 = arith.constant 0 : index
    %c0_20 = arith.constant 0 : index
    %33 = vector.load %arg8[%c0_19, %c0_20] : memref<4x1xf32, #tpu.memory_space<vmem>>, vector<4x1xf32>
    %34 = vector.broadcast %33 : vector<4x1xf32> to vector<4x8xf32>
    %35 = arith.addf %32, %34 : vector<4x8xf32>
    %36 = vector.extract_strided_slice %35 {offsets = [0, 0], sizes = [1, 8], strides = [1, 1]} : vector<4x8xf32> to vector<1x8xf32>
    %c0_21 = arith.constant 0 : index
    %c0_22 = arith.constant 0 : index
    %37 = vector.load %arg9[%c0_21, %c0_22] : memref<1x8xf32, #tpu.memory_space<vmem>>, vector<1x8xf32>
    tpu.vector_store %arg9[%c0_21, %c0_22], %36 {strides = array<i32>} : memref<1x8xf32, #tpu.memory_space<vmem>>, vector<1x8xf32>,
    %38 = vector.extract_strided_slice %35 {offsets = [1, 0], sizes = [1, 8], strides = [1, 1]} : vector<4x8xf32> to vector<1x8xf32>
    %cst_23 = arith.constant 5.000000e-01 : f32
    %39 = vector.broadcast %cst_23 : f32 to vector<1x8xf32>
    %40 = arith.mulf %39, %38 : vector<1x8xf32>
    %41 = math.tanh %40 : vector<1x8xf32>
    %cst_24 = arith.constant 1.000000e+00 : f32
    %42 = vector.broadcast %cst_24 : f32 to vector<1x8xf32>
    %43 = arith.addf %41, %42 : vector<1x8xf32>
    %cst_25 = arith.constant 5.000000e-01 : f32
    %44 = vector.broadcast %cst_25 : f32 to vector<1x8xf32>
    %45 = arith.mulf %44, %43 : vector<1x8xf32>
    %c0_26 = arith.constant 0 : index
    %c0_27 = arith.constant 0 : index
    %46 = vector.load %arg10[%c0_26, %c0_27] : memref<1x8xf32, #tpu.memory_space<vmem>>, vector<1x8xf32>
    tpu.vector_store %arg10[%c0_26, %c0_27], %45 {strides = array<i32>} : memref<1x8xf32, #tpu.memory_space<vmem>>, vector<1x8xf32>,
    %47 = vector.extract_strided_slice %35 {offsets = [2, 0], sizes = [1, 8], strides = [1, 1]} : vector<4x8xf32> to vector<1x8xf32>
    %cst_28 = arith.constant 0.000000e+00 : f32
    %48 = vector.broadcast %cst_28 : f32 to vector<1x8xf32>
    %49 = arith.maximumf %47, %48 : vector<1x8xf32>
    %50 = math.absf %47 : vector<1x8xf32>
    %cst_29 = arith.constant 0.000000e+00 : f32
    %51 = vector.broadcast %cst_29 : f32 to vector<1x8xf32>
    %52 = arith.subf %51, %50 : vector<1x8xf32>
    %53 = math.exp %52 : vector<1x8xf32>
    %54 = math.log1p %53 : vector<1x8xf32>
    %55 = arith.addf %49, %54 : vector<1x8xf32>
    %c0_30 = arith.constant 0 : index
    %c0_31 = arith.constant 0 : index
    %56 = vector.load %arg11[%c0_30, %c0_31] : memref<1x8xf32, #tpu.memory_space<vmem>>, vector<1x8xf32>
    tpu.vector_store %arg11[%c0_30, %c0_31], %55 {strides = array<i32>} : memref<1x8xf32, #tpu.memory_space<vmem>>, vector<1x8xf32>,
    %57 = vector.extract_strided_slice %35 {offsets = [3, 0], sizes = [1, 8], strides = [1, 1]} : vector<4x8xf32> to vector<1x8xf32>
    %cst_32 = arith.constant 0.000000e+00 : f32
    %58 = vector.broadcast %cst_32 : f32 to vector<1x8xf32>
    %59 = arith.maximumf %57, %58 : vector<1x8xf32>
    %60 = math.absf %57 : vector<1x8xf32>
    %cst_33 = arith.constant 0.000000e+00 : f32
    %61 = vector.broadcast %cst_33 : f32 to vector<1x8xf32>
    %62 = arith.subf %61, %60 : vector<1x8xf32>
    %63 = math.exp %62 : vector<1x8xf32>
    %64 = math.log1p %63 : vector<1x8xf32>
    %65 = arith.addf %59, %64 : vector<1x8xf32>
    %cst_34 = arith.constant 5.000000e-01 : f32
    %66 = vector.broadcast %cst_34 : f32 to vector<1x8xf32>
    %67 = arith.addf %65, %66 : vector<1x8xf32>
    %c0_35 = arith.constant 0 : index
    %c0_36 = arith.constant 0 : index
    %68 = vector.load %arg12[%c0_35, %c0_36] : memref<1x8xf32, #tpu.memory_space<vmem>>, vector<1x8xf32>
    tpu.vector_store %arg12[%c0_35, %c0_36], %67 {strides = array<i32>} : memref<1x8xf32, #tpu.memory_space<vmem>>, vector<1x8xf32>,
    return
  }
}

</mosaic_0001>

<bundles_post_ra>
// kernel: model_forward.1
= control target key start
LH: loop header
LB: loop body
LE: loop exit
PB: predicated region body
PF: predicated region fallthrough
CT: control target
= control target key end

     0   :  { %18 = vsyncpa [#allocation3], 0  ;;  %s878_s0 = inlined_call_operand.vmem [shape: f32[1,8], index: 0, kind: input, shape index: {}]   ;;  %s879_s1 = inlined_call_operand.vmem [shape: f32[32,1], index: 1, kind: input, shape index: {}]   ;;  %s880_s2 = inlined_call_operand.vmem [shape: f32[32,1], index: 2, kind: input, shape index: {}]   ;;  %s881_s3 = inlined_call_operand.vmem [shape: f32[32,1], index: 3, kind: input, shape index: {}]   ;;  %s882_s4 = inlined_call_operand.vmem [shape: f32[32,1], index: 4, kind: input, shape index: {}]   ;;  %s883_s5 = inlined_call_operand.vmem [shape: f32[32,32], index: 5, kind: input, shape index: {}]   ;;  %s884_s6 = inlined_call_operand.vmem [shape: f32[32,1], index: 6, kind: input, shape index: {}]   ;;  %s885_s7 = inlined_call_operand.vmem [shape: f32[4,32], index: 7, kind: input, shape index: {}]   ;;  %s886_s8 = inlined_call_operand.vmem [shape: f32[4,1], index: 8, kind: input, shape index: {}]   ;;  %s887_s9 = inlined_call_operand.hbm [shape: f32[1,8], index: 9, kind: output, shape index: {0}]   ;;  %s888_s10 = inlined_call_operand.hbm [shape: f32[1,8], index: 10, kind: output, shape index: {1}]   ;;  %s889_s11 = inlined_call_operand.hbm [shape: f32[1,8], index: 11, kind: output, shape index: {2}]   ;;  %s890_s12 = inlined_call_operand.hbm [shape: f32[1,8], index: 12, kind: output, shape index: {3}]  }
   0x1   :  { %19 = vsyncpa [#allocation5], 0  ;;  %v54_v0 = vld [vmem:[%s879_s1] sm:$0xff]  ;;  %v656_v2 = vmov 0   ;;  %v55_v3 = vld [vmem:[%s879_s1 + $0x8] sm:$0xff] }
   0x2   :  { %v50_v1 = vld [vmem:[%s882_s4] sm:$0xff]  ;;  %551 = vset.pattern.permute.xlu1 %v656_v2  ;;  %550 = vset.pattern.permute.xlu0 %v656_v2  ;;  %v51_v4 = vld [vmem:[%s882_s4 + $0x8] sm:$0xff] }
   0x3   :  { %60 = vperm.xlu0 %550, %v54_v0   ;;  %90 = vperm.xlu1 %551, %v50_v1   ;;  %v112_v5 = vld [vmem:[%s880_s2] sm:$0xff]  ;;  %v113_v6 = vld [vmem:[%s880_s2 + $0x8] sm:$0xff] }
   0x7   :  { %65 = vperm.xlu0 %550, %v55_v3   ;;  %95 = vperm.xlu1 %551, %v51_v4  }
   0x8   :  { %20 = vsyncpa [#allocation8], 0  ;;  %v56_v7 = vld [vmem:[%s879_s1 + $0x10] sm:$0xff]  ;;  %v57_v8 = vld [vmem:[%s879_s1 + $0x18] sm:$0xff]  ;;  %vm220_vm0 = vcmask 261120   ;;  %v79_v24 = vlaneseq  ;;  %vm658_vm3 = vmmov 0  }
   0x9   :  { %v150_v9 = vld [vmem:[%s881_s3] sm:$0xff]  ;;  %v151_v10 = vld [vmem:[%s881_s3 + $0x8] sm:$0xff]  ;;  %v52_v11 = vld [vmem:[%s882_s4 + $0x10] sm:$0xff]  ;;  %s660_s30 = smov [#allocation2]   ;;  %vm402_vm4 = vcmask 57344  }
   0xa   :  { %v53_v12 = vld [vmem:[%s882_s4 + $0x18] sm:$0xff]  ;;  %v114_v13 = vld [vmem:[%s880_s2 + $0x10] sm:$0xff]  ;;  %v196_v17 = vld [vmem:[%s884_s6] sm:$0xff]  ;;  %v80_v25 = vshrl.u32 %v79_v24, 7  ;;  %v659_v24 = vmov 0.0   ;;  %s436_s13 = sshll.u32 %s660_s30, 4  ;;  %s437_s13 = int_to_ptr.vmem [resolvable:$true] %s436_s13 }
   0xb   :  { %118 = vperm.xlu0 %550, %v112_v5   ;;  %123 = vperm.xlu1 %551, %v113_v6   ;;  %v115_v14 = vld [vmem:[%s880_s2 + $0x18] sm:$0xff]  ;;  %v152_v15 = vld [vmem:[%s881_s3 + $0x10] sm:$0xff]  ;;  %v197_v18 = vld [vmem:[%s884_s6 + $0x8] sm:$0xff]  ;;  %s562_s14 = scalar_lea.vmem %s437_s13, 16  ;;  %p567_p1 = scmp.lt.s32.totalorder %s437_s13, %s437_s13 }
   0xc   :  { %v153_v16 = vld [vmem:[%s881_s3 + $0x18] sm:$0xff]  ;;  %v198_v19 = vld [vmem:[%s884_s6 + $0x10] sm:$0xff]  ;;  %v323_v21 = vld [vmem:[%s886_s8] sm:$0xf]  ;;  %v81_v30 = vsub.s32 0, %v80_v25  ;;  %525 = vmatprep.mubr.msk.f32.mxu1 %vm658_vm3, %v659_v24  ;;  %p563_p0 = scmp.ne.s32.totalorder %s437_s13, %s562_s14 }
   0xd   :  { %v199_v20 = vld [vmem:[%s884_s6 + $0x18] sm:$0xff]  ;;  %v192_v22 = vld [vmem:[%s883_s5] sm:$0xff] }
   0xe   :  { %511 = vmatprep.mubr.msk.f32.mxu0 %vm220_vm0, %v192_v22  ;;  %v39_v23 = vld [vmem:[%s878_s0] sm:$0x1]  ;;  %v195_v22 = vld [vmem:[%s883_s5 + $0x18] sm:$0xff] }
   0xf   :  { %70 = vperm.xlu0 %550, %v56_v7   ;;  %75 = vperm.xlu1 %551, %v57_v8   ;;  %552 = vrsqrt.f32 %v39_v23  ;;  %v40_v31 = vmul.f32 0.01, %v39_v23  ;;  %vm45_vm1 = vcmp.eq.f32.partialorder %v39_v23, inf  ;;  %v48_v36 = vand.u32 2147483648, %v39_v23 }
  0x10   :  { %554 = vlog2.f32 %v39_v23  ;;  %vm47_vm2 = vcmp.eq.f32.partialorder %v39_v23, 0.0 }
  0x11   :  { %v82_v37 = vrot.slane %v40_v31, %v81_v30 }
  0x13   :  { %156 = vperm.xlu0 %550, %v150_v9   ;;  %161 = vperm.xlu1 %551, %v151_v10  }
  0x17   :  { %100 = vperm.xlu0 %550, %v52_v11   ;;  %105 = vperm.xlu1 %551, %v53_v12  }
  0x19   :  { %v553_v26 = vpop.eup %552 }
  0x1a   :  { %v555_v29 = vpop.eup %554  ;;  %v44_v32 = vmul.f32 %v553_v26, %v39_v23 }
  0x1b   :  { %128 = vperm.xlu0 %550, %v114_v13   ;;  %133 = vperm.xlu1 %551, %v115_v14   ;;  %v42_v35 = vmul.f32 0.6931472, %v555_v29 }
  0x1c   :  { %v46_v38 = vsel %vm45_vm1, %v39_v23, %v44_v32  ;;  %v657_v23 = vmov 0.0|0.0  }
  0x1d   :  { %v140_v41 = vrot.slane %v42_v35, %v81_v30  ;;  %v49_v42 = vsel %vm47_vm2, %v48_v36, %v46_v38  ;;  %536 = vmatprep.subr.bf16.mxu1 %v657_v23 }
  0x1e   :  { %v178_v49 = vrot.slane %v49_v42, %v81_v30 }
  0x1f   :  { %166 = vperm.xlu0 %550, %v152_v15   ;;  %171 = vperm.xlu1 %551, %v153_v16  }
  0x23   :  { %202 = vperm.xlu0 %550, %v196_v17   ;;  %207 = vperm.xlu1 %551, %v197_v18  }
  0x27   :  { %212 = vperm.xlu0 %550, %v198_v19   ;;  %217 = vperm.xlu1 %551, %v199_v20   ;;  %v193_v20 = vld [vmem:[%s883_s5 + $0x8] sm:$0xff] }
  0x2b   :  { %326 = vperm.xlu0 %550, %v323_v21   ;;  %v194_v21 = vld [vmem:[%s883_s5 + $0x10] sm:$0xff] }
  0x82   :  { %v61_v27 = vpop.permute.xlu0 %60  ;;  %v91_v28 = vpop.permute.xlu1 %90 }
  0x83   :  { %v84_v43 = vmul.f32 %v82_v37, %v61_v27 }
  0x85   :  { %v108_v50 = vadd.f32 %v91_v28, %v84_v43  ;;  %v322_v43 = vld [vmem:[%s885_s7] sm:$0xf]  ;;  %s566_s7 = scalar_lea.vmem %s437_s13, 32 }
  0x86   :  { %v66_v33 = vpop.permute.xlu0 %65  ;;  %v96_v34 = vpop.permute.xlu1 %95  ;;  %p568_p2 = scmp.lt.s32.totalorder %s566_s7, %s562_s14 }
  0x87   :  { %v85_v44 = vmul.f32 %v82_v37, %v66_v33 }
  0x88   :  { %p569_p3 = por %p568_p2, %p567_p1 }
  0x89   :  { %v109_v51 = vadd.f32 %v96_v34, %v85_v44 }
  0x8a   :  { %v119_v39 = vpop.permute.xlu0 %118  ;;  %v124_v40 = vpop.permute.xlu1 %123  ;;  %p570_p4 = pnand %p569_p3, %p563_p0 }
  0x8b   :  { %v142_v47 = vmul.f32 %v140_v41, %v119_v39  ;;  %v143_v48 = vmul.f32 %v140_v41, %v124_v40 }
  0x8d   :  { %v146_v54 = vadd.f32 %v142_v47, %v108_v50  ;;  %v147_v55 = vadd.f32 %v143_v48, %v109_v51 }
  0x8e   :  { %v71_v45 = vpop.permute.xlu0 %70  ;;  %v76_v46 = vpop.permute.xlu1 %75 }
  0x8f   :  { %v86_v3 = vmul.f32 %v82_v37, %v71_v45  ;;  %v87_v4 = vmul.f32 %v82_v37, %v76_v46 }
  0x92   :  { %v157_v52 = vpop.permute.xlu0 %156  ;;  %v162_v53 = vpop.permute.xlu1 %161 }
  0x93   :  { %v180_v56 = vmul.f32 %v178_v49, %v157_v52  ;;  %v181_v57 = vmul.f32 %v178_v49, %v162_v53 }
  0x95   :  { %v184_v58 = vadd.f32 %v180_v56, %v146_v54  ;;  %v185_v59 = vadd.f32 %v181_v57, %v147_v55 }
  0x96   :  { %v101_v60 = vpop.permute.xlu0 %100  ;;  %v106_v61 = vpop.permute.xlu1 %105 }
  0x97   :  { %v188_v62 = vmax.f32 %v184_v58, 0.0  ;;  %v189_v63 = vmax.f32 %v185_v59, 0.0  ;;  %v110_v7 = vadd.f32 %v101_v60, %v86_v3  ;;  %v111_v8 = vadd.f32 %v106_v61, %v87_v4 }
  0x99   :  { %v528_v0 = vpack.c.bf16 %v189_v63, %v188_v62 }
  0x9a   :  { %v129_v1 = vpop.permute.xlu0 %128  ;;  %v134_v2 = vpop.permute.xlu1 %133 }
  0x9b   :  { %v144_v5 = vmul.f32 %v140_v41, %v129_v1  ;;  %v145_v6 = vmul.f32 %v140_v41, %v134_v2  ;;  %529 = vmatprep.subr.bf16.mxu0 %v528_v0 }
  0x9c   :  { %531 = vmatpush3.bf16.msra.mxu0 %v528_v0 }
  0x9d   :  { %v148_v11 = vadd.f32 %v144_v5, %v110_v7  ;;  %v149_v12 = vadd.f32 %v145_v6, %v111_v8 }
  0x9e   :  { %v167_v9 = vpop.permute.xlu0 %166  ;;  %v172_v10 = vpop.permute.xlu1 %171 }
  0x9f   :  { %v182_v13 = vmul.f32 %v178_v49, %v167_v9  ;;  %v183_v14 = vmul.f32 %v178_v49, %v172_v10 }
  0xa1   :  { %v186_v15 = vadd.f32 %v182_v13, %v148_v11  ;;  %v187_v16 = vadd.f32 %v183_v14, %v149_v12 }
  0xa2   :  { %v208_v25 = vpop.permute.xlu1 %207  ;;  %v203_v26 = vpop.permute.xlu0 %202 }
  0xa3   :  { %v190_v17 = vmax.f32 %v186_v15, 0.0  ;;  %v191_v18 = vmax.f32 %v187_v16, 0.0 }
  0xa5   :  { %v532_v19 = vpack.c.bf16 %v191_v18, %v190_v17 }
  0xa6   :  { %v218_v32 = vpop.permute.xlu1 %217  ;;  %v213_v35 = vpop.permute.xlu0 %212 }
  0xa7   :  { %533 = vmatprep.subr.bf16.mxu0 %v532_v19 }
  0xa8   :  { %535 = vmatpush3.bf16.msra.mxu0 %v532_v19 }
  0xaa   :  { %v327_v44 = vpop.permute.xlu0 %326 }
  0xab   :  { %512 = vmatmul.mubr.msk.f32.vlgmr.msra.gmra.mrb[0].mxu0 %vm220_vm0, %v193_v20 }
  0xac   :  { %514 = vmatprep.mubr.msk.f32.mxu0 %vm220_vm0, %v194_v21 }
  0xaf   :  { %515 = vmatmul.mubr.msk.f32.gmra.mrb[2].mxu0 %vm220_vm0, %v195_v22 }
 0x17e   :  { %v513_v27 = vpop.f32.mrb[0].mxu0 }
 0x17f   :  { %v305_v28 = vadd.f32 %v513_v27, %v208_v25  ;;  %v299_v29 = vpop.f32.mrb[1].mxu0 }
 0x180   :  { %v300_v30 = vadd.f32 %v299_v29, %v203_v26 }
 0x181   :  { %v319_v31 = vmax.f32 %v305_v28, 0.0 }
 0x182   :  { %v318_v33 = vmax.f32 %v300_v30, 0.0  ;;  %v516_v34 = vpop.f32.mrb[2].mxu0 }
 0x183   :  { %v315_v36 = vadd.f32 %v516_v34, %v218_v32  ;;  %v309_v37 = vpop.f32.mrb[3].mxu0 }
 0x184   :  { %v310_v38 = vadd.f32 %v309_v37, %v213_v35  ;;  %v537_v39 = vpack.c.bf16 %v319_v31, %v318_v33 }
 0x185   :  { %v321_v40 = vmax.f32 %v315_v36, 0.0 }
 0x186   :  { %v320_v41 = vmax.f32 %v310_v38, 0.0  ;;  %538 = vmatpush3.bf16.msra.mxu1 %v537_v39 }
 0x187   :  { %539 = vmatprep.subr.bf16.mxu1 %v657_v23 }
 0x188   :  { %v540_v42 = vpack.c.bf16 %v321_v40, %v320_v41 }
 0x18a   :  { %541 = vmatpush3.bf16.msra.mxu1 %v540_v42 }
 0x18d   :  { %526 = vmatmul.mubr.msk.f32.vlgmr.msra.gmra.mrb[0].mxu1 %vm220_vm0, %v322_v43 }
 0x260   :  { %v398_v45 = vpop.f32.mrb[0].mxu1 }
 0x261   :  { %v815_v46 = vadd.f32 %v398_v45, %v327_v44  ;;  %v527_v47 = vpop.f32.mrb[1].mxu1 }
 0x263   :  { %v411_v48 = vand.u32 2147483647, %v815_v46  ;;  %v404_v49 = vmul.f32 0.5, %v815_v46  ;;  %403 = vst.msk [vmem:[#allocation2] sm:$0x1] %vm402_vm4, %v815_v46 }
 0x264   :  { %573 = shalt.err (!%p570_p4)
}
 0x265   :  { %s574_s16 = scalar_lea.hbm %s887_s9, 16 }
 0x266   :  { %p575_p5 = scmp.ne.s32.totalorder %s887_s9, %s574_s16  ;;  %p578_p6 = scmp.lt.u32.totalorder %s574_s16, %s887_s9 }
 0x268   :  { %p580_p7 = pnand %p578_p6, %p575_p5 }
 0x26a   :  { %583 = shalt.err (!%p580_p7)
}
 0x26b   :  { %439 = dma.vmem_to_hbm [thread:$0]  %s437_s13, 16, %s887_s9, [#allocation3]   ;;  %v412_v50 = vsub.f32 0.0, %v411_v48  ;;  %556 = vtanh.f32 %v404_v49  ;;  %vm408_vm5 = vcmask 58369  }
 0x26c   :  { %s661_s3 = smov [#allocation4]  }
 0x26d   :  { %v413_v51 = vmul.f32 1.442695, %v412_v50  ;;  %s446_s22 = sshll.u32 %s661_s3, 4  ;;  %s447_s22 = int_to_ptr.vmem [resolvable:$true] %s446_s22 }
 0x26e   :  { %s584_s23 = scalar_lea.vmem %s447_s22, 16  ;;  %s588_s24 = scalar_lea.vmem %s447_s22, 32 }
 0x26f   :  { %558 = vpow2.f32 %v413_v51  ;;  %p585_p8 = scmp.ne.s32.totalorder %s447_s22, %s584_s23  ;;  %p589_p9 = scmp.lt.s32.totalorder %s447_s22, %s447_s22 }
 0x270   :  { %p590_p10 = scmp.lt.s32.totalorder %s588_s24, %s584_s23 }
 0x272   :  { %p591_p11 = por %p590_p10, %p589_p9 }
 0x274   :  { %p592_p12 = pnand %p591_p11, %p585_p8 }
 0x275   :  { %v557_v52 = vpop.eup %556 }
 0x276   :  { %v406_v53 = vadd.f32 1.0, %v557_v52 }
 0x278   :  { %v407_v54 = vmul.f32 0.5, %v406_v53 }
 0x279   :  { %v559_v55 = vpop.eup %558 }
 0x27a   :  { %409 = vst.msk [vmem:[#allocation4 - $0x1] sm:$0x2] %vm408_vm5, %v407_v54  ;;  %v415_v56 = vadd.f32 1.0, %v559_v55 }
 0x27b   :  { %595 = shalt.err (!%p592_p12)
}
 0x27c   :  { %s596_s26 = scalar_lea.hbm %s888_s10, 16 }
 0x27d   :  { %p597_p13 = scmp.ne.s32.totalorder %s888_s10, %s596_s26  ;;  %p600_p0 = scmp.lt.u32.totalorder %s596_s26, %s888_s10 }
 0x27f   :  { %p602_p1 = pnand %p600_p0, %p597_p13 }
 0x281   :  { %605 = shalt.err (!%p602_p1)
}
 0x282   :  { %449 = dma.vmem_to_hbm [thread:$0]  %s447_s22, 16, %s888_s10, [#allocation5]   ;;  %560 = vlog2.f32 %v415_v56  ;;  %v418_v57 = vmul.f32 -0.5, %v559_v55  ;;  %v421_v59 = vand.u32 2147483647, %v559_v55  ;;  %v410_v63 = vmax.f32 %v815_v46, 0.0 }
 0x283   :  { %s662_s5 = smov [#allocation6]   ;;  %vm425_vm7 = vcmask 59394   ;;  %s663_s30 = smov [#allocation7]   ;;  %vm428_vm8 = vcmask 60419  }
 0x284   :  { %v419_v58 = vadd.f32 1.0, %v418_v57  ;;  %s456_s29 = sshll.u32 %s662_s5, 4  ;;  %vm422_vm6 = vcmp.lt.f32.partialorder %v421_v59, 0.0004427343  ;;  %s466_s13 = sshll.u32 %s663_s30, 4  ;;  %s457_s29 = int_to_ptr.vmem [resolvable:$true] %s456_s29  ;;  %s845_s13 = int_to_ptr.vmem [resolvable:$true] %s466_s13 }
 0x285   :  { %s606_s10 = scalar_lea.vmem %s457_s29, 16  ;;  %s610_s14 = scalar_lea.vmem %s457_s29, 32 }
 0x286   :  { %v420_v62 = vmul.f32 %v559_v55, %v419_v58  ;;  %p607_p2 = scmp.ne.s32.totalorder %s457_s29, %s606_s10  ;;  %p611_p3 = scmp.lt.s32.totalorder %s457_s29, %s457_s29 }
 0x287   :  { %p612_p4 = scmp.lt.s32.totalorder %s610_s14, %s606_s10 }
 0x289   :  { %p613_p5 = por %p612_p4, %p611_p3 }
 0x28b   :  { %p614_p6 = pnand %p613_p5, %p607_p2 }
 0x28c   :  { %v561_v60 = vpop.eup %560 }
 0x28d   :  { %v417_v61 = vmul.f32 0.6931472, %v561_v60 }
 0x28f   :  { %v423_v0 = vsel %vm422_vm6, %v420_v62, %v417_v61 }
 0x290   :  { %v424_v1 = vadd.f32 %v423_v0, %v410_v63 }
 0x292   :  { %426 = vst.msk [vmem:[#allocation6 - $0x2] sm:$0x4] %vm425_vm7, %v424_v1  ;;  %v427_v2 = vadd.f32 0.5, %v424_v1 }
 0x293   :  { %617 = shalt.err (!%p614_p6)
}
 0x294   :  { %s618_s4 = scalar_lea.hbm %s889_s11, 16 }
 0x295   :  { %p619_p7 = scmp.ne.s32.totalorder %s889_s11, %s618_s4  ;;  %p622_p8 = scmp.lt.u32.totalorder %s618_s4, %s889_s11 }
 0x297   :  { %p624_p9 = pnand %p622_p8, %p619_p7 }
 0x299   :  { %627 = shalt.err (!%p624_p9)
}
 0x29a   :  { %459 = dma.vmem_to_hbm [thread:$0]  %s457_s29, 16, %s889_s11, [#allocation5]   ;;  %429 = vst.msk [vmem:[#allocation7 - $0x3] sm:$0x8] %vm428_vm8, %v427_v2 }
 0x29b   :  { %s628_s21 = scalar_lea.vmem %s845_s13, 16  ;;  %s632_s3 = scalar_lea.vmem %s845_s13, 32 }
 0x29c   :  { %p629_p10 = scmp.ne.s32.totalorder %s845_s13, %s628_s21  ;;  %p633_p11 = scmp.lt.s32.totalorder %s845_s13, %s845_s13 }
 0x29d   :  { %p634_p12 = scmp.lt.s32.totalorder %s632_s3, %s628_s21 }
 0x29f   :  { %p635_p13 = por %p634_p12, %p633_p11 }
 0x2a1   :  { %p636_p0 = pnand %p635_p13, %p629_p10 }
 0x2a3   :  { %639 = shalt.err (!%p636_p0)
}
 0x2a4   :  { %s640_s24 = scalar_lea.hbm %s890_s12, 16 }
 0x2a5   :  { %p641_p1 = scmp.ne.s32.totalorder %s890_s12, %s640_s24  ;;  %p644_p2 = scmp.lt.u32.totalorder %s640_s24, %s890_s12 }
 0x2a7   :  { %p646_p3 = pnand %p644_p2, %p641_p1 }
 0x2a9   :  { %649 = shalt.err (!%p646_p3)
}
 0x2aa   :  { %469 = dma.vmem_to_hbm [thread:$0]  %s845_s13, 16, %s890_s12, [#allocation8]  }
 0x2ab   :  { %650 = dma.done.wait [#allocation3], 16  }
 0x2ac   :  { %651 = vsyncadd [#allocation3], 4294967280 }
 0x2ad   :  { %652 = dma.done.wait [#allocation5], 32  }
 0x2ae   :  { %653 = vsyncadd [#allocation5], 4294967264 }
 0x2af   :  { %654 = dma.done.wait [#allocation8], 16  }
 0x2b0   :  { %655 = vsyncadd [#allocation8], 4294967280 }
 0x2b1   :  { %482 = vsyncpa [#allocation3], 1 }
 0x2b2   :  { %483 = vsyncpa [#allocation5], 1 }
 0x2b3   :  { %484 = vsyncpa [#allocation8], 1 }

</bundles_post_ra>
